<compile_context>
chip_gen: v5e
topology: v5e:2x2
jax: 0.10.0
libtpu: 0.0.40
codegen_flags: <defaults>
</compile_context>

<pallas_src>
import jax
import jax.numpy as jnp
from jax.experimental import pallas as pl
from jax.experimental.pallas import tpu as pltpu

_IN = 28 * 28
_H1, _H2, _H3 = 256, 128, 64
_OUT = 10
_OUT_PAD = 128        # lane-dense padded fc4 width (in-kernel only)
_NEG = -1e30          # "-inf" for padded logit lanes (f32-safe, exp underflows to 0)


def _mlp_kernel(x_ref, w1_ref, b1_ref, w2_ref, b2_ref, w3_ref, b3_ref,
                w4_ref, b4_ref, out_ref):
    # x tile arrives as f32 straight from HBM; cast to bf16 on the VPU here so
    # the wrapper does not need an extra read+write pass over x.
    x = x_ref[...].astype(jnp.bfloat16)

    h = jnp.dot(x, w1_ref[...],
                preferred_element_type=jnp.float32) + b1_ref[...]
    h = jnp.maximum(h, 0.0).astype(jnp.bfloat16)   # dropout == identity (eval)

    h = jnp.dot(h, w2_ref[...],
                preferred_element_type=jnp.float32) + b2_ref[...]
    h = jnp.maximum(h, 0.0).astype(jnp.bfloat16)

    h = jnp.dot(h, w3_ref[...],
                preferred_element_type=jnp.float32) + b3_ref[...]
    h = jnp.maximum(h, 0.0).astype(jnp.bfloat16)

    # fc4, padded to 128 lanes inside the kernel: pad lanes get _NEG bias so
    # they vanish under the softmax max / sum.
    logits = jnp.dot(h, w4_ref[...],
                     preferred_element_type=jnp.float32) + b4_ref[...]

    # LogSoftmax(dim=1), numerically stable, f32, over the lane-dense 128 cols.
    m = jnp.max(logits, axis=1, keepdims=True)
    shifted = logits - m
    lse = jnp.log(jnp.sum(jnp.exp(shifted), axis=1, keepdims=True))

    # Store only the 10 real classes (narrow, contiguous writeback).
    out_ref[...] = (shifted - lse)[:, :_OUT].astype(out_ref.dtype)


def _choose_tb(batch, tb_max=1024):
    """Pick a batch tile: big enough to amortize step overhead, >=2 grid steps
    when the batch allows it (so v7x's two TensorCores both get work)."""
    b8 = pl.cdiv(batch, 8) * 8            # sublane-aligned batch
    if b8 <= tb_max:
        if b8 >= 512 and (b8 // 2) % 8 == 0:
            return b8 // 2                # two equal tiles -> dual-TC on v7x
        return b8                         # single tile, no padding waste
    return tb_max


def mlp_forward(x_nchw, params, *, tb=None):
    """x_nchw: (B, 1, 28, 28) float32 -> (B, 10) log-probabilities (f32)."""
    B = x_nchw.shape[0]
    x2d = x_nchw.reshape(B, _IN).astype(jnp.float32)   # x.view(-1, 784); stays f32

    (w1, b1), (w2, b2), (w3, b3), (w4, b4) = params

    # bf16 weights (f32 acc on MXU); biases stay f32.
    w1b = w1.astype(jnp.bfloat16)
    w2b = w2.astype(jnp.bfloat16)
    w3b = w3.astype(jnp.bfloat16)
    # Lane-dense fc4: pad to 128 output columns (zero weights, _NEG bias).
    w4p = jnp.zeros((_H3, _OUT_PAD), jnp.bfloat16).at[:, :_OUT].set(
        w4.astype(jnp.bfloat16))
    b4p = jnp.full((1, _OUT_PAD), _NEG, jnp.float32).at[:, :_OUT].set(b4)

    if tb is None:
        tb = _choose_tb(B)
    grid_b = pl.cdiv(B, tb)
    b_pad = grid_b * tb
    if b_pad != B:
        # Only hit for ragged batches; padded rows are sliced off below.
        x2d = jnp.pad(x2d, ((0, b_pad - B), (0, 0)))

    flops = 2 * b_pad * (_IN * _H1 + _H1 * _H2 + _H2 * _H3 + _H3 * _OUT_PAD)
    bytes_accessed = (
        x2d.size * 4                                           # f32 x stream
        + (w1b.size + w2b.size + w3b.size + w4p.size) * 2      # bf16 weights
        + (b1.size + b2.size + b3.size + b4p.size) * 4         # f32 biases
        + b_pad * _OUT * 4)                                    # narrow f32 out
    cost = pl.CostEstimate(flops=flops,
                           transcendentals=b_pad * (_OUT_PAD + 1),
                           bytes_accessed=bytes_accessed)

    const = lambda i: (0, 0)   # weights/biases: resident, loaded once
    out = pl.pallas_call(
        _mlp_kernel,
        out_shape=jax.ShapeDtypeStruct((b_pad, _OUT), jnp.float32),
        grid=(grid_b,),
        in_specs=[
            pl.BlockSpec((tb, _IN), lambda i: (i, 0)),        # x: batch-tiled
            pl.BlockSpec((_IN, _H1), const),
            pl.BlockSpec((1, _H1), const),
            pl.BlockSpec((_H1, _H2), const),
            pl.BlockSpec((1, _H2), const),
            pl.BlockSpec((_H2, _H3), const),
            pl.BlockSpec((1, _H3), const),
            pl.BlockSpec((_H3, _OUT_PAD), const),
            pl.BlockSpec((1, _OUT_PAD), const),
        ],
        out_specs=pl.BlockSpec((tb, _OUT), lambda i: (i, 0)), # narrow output tile
        compiler_params=pltpu.CompilerParams(
            dimension_semantics=("parallel",),
            vmem_limit_bytes=32 * 1024 * 1024),
        cost_estimate=cost,
    )(x2d, w1b, b1, w2b, b2, w3b, b3, w4p, b4p)

    return out[:B]


def init_params(key):
    """Deterministic init mimicking nn.Linear's U(-1/sqrt(fan_in), +1/sqrt(fan_in))."""
    sizes = [(_IN, _H1), (_H1, _H2), (_H2, _H3), (_H3, _OUT)]
    params = []
    for (fan_in, fan_out) in sizes:
        key, kw, kb = jax.random.split(key, 3)
        bound = 1.0 / jnp.sqrt(fan_in)
        # Stored as (in_features, out_features): transposed PyTorch weight.
        w = jax.random.uniform(kw, (fan_in, fan_out), jnp.float32, -bound, bound)
        b = jax.random.uniform(kb, (1, fan_out), jnp.float32, -bound, bound)
        params.append((w, b))
    return params


def mlp_reference(x_nchw, params):
    """Pure-JAX f32 reference of Net.forward (dropout = identity)."""
    x = x_nchw.reshape(x_nchw.shape[0], _IN)
    (w1, b1), (w2, b2), (w3, b3), (w4, b4) = params
    h = jnp.maximum(x @ w1 + b1, 0.0)
    h = jnp.maximum(h @ w2 + b2, 0.0)
    h = jnp.maximum(h @ w3 + b3, 0.0)
    logits = h @ w4 + b4
    return jax.nn.log_softmax(logits, axis=1)


if __name__ == "__main__":
    key = jax.random.PRNGKey(0)
    key, kx = jax.random.split(key)

    B = 8
    x = jax.random.normal(kx, (B, 1, 28, 28), dtype=jnp.float32)  # NCHW like PyTorch
    params = init_params(key)

    out = mlp_forward(x, params)
    out = jax.block_until_ready(out)

    # Sanity: shape, finiteness, rows sum to 1 in prob space, close to f32 ref
    # (bf16 weight/activation quantization gives ~1e-2-level differences).
    ref = mlp_reference(x, params)
    row_sums = jnp.exp(out).sum(axis=1)
    assert out.shape == (B, 10)
    assert bool(jnp.all(jnp.isfinite(out)))
    assert jnp.allclose(row_sums, jnp.ones((B,)), atol=1e-4)
    assert float(jnp.max(jnp.abs(out - ref))) < 0.2

    print("KERNEL_OK")
</pallas_src>

<mosaic_0001>
module attributes {stable_mosaic.version = 11 : i64} {
  func.func @_mlp_kernel(%arg0: i32, %arg1: memref<8x784xf32, #tpu.memory_space<vmem>>, %arg2: memref<784x256xbf16, #tpu.memory_space<vmem>>, %arg3: memref<1x256xf32, #tpu.memory_space<vmem>>, %arg4: memref<256x128xbf16, #tpu.memory_space<vmem>>, %arg5: memref<1x128xf32, #tpu.memory_space<vmem>>, %arg6: memref<128x64xbf16, #tpu.memory_space<vmem>>, %arg7: memref<1x64xf32, #tpu.memory_space<vmem>>, %arg8: memref<64x128xbf16, #tpu.memory_space<vmem>>, %arg9: memref<1x128xf32, #tpu.memory_space<vmem>>, %arg10: memref<8x10xf32, #tpu.memory_space<vmem>>) attributes {dimension_semantics = [#tpu.dimension_semantics<parallel>], iteration_bounds = array<i64: 1>, scalar_prefetch = 0 : i64, scratch_operands = 0 : i64, tpu.core_type = #tpu.core_type<tc>, window_params = [{transform_indices = @transform_0, window_bounds = array<i64: 8, 784>}, {pipeline_mode = #tpu.pipeline_mode<synchronous>, transform_indices = @transform_1, window_bounds = array<i64: 784, 256>}, {pipeline_mode = #tpu.pipeline_mode<synchronous>, transform_indices = @transform_2, window_bounds = array<i64: 1, 256>}, {pipeline_mode = #tpu.pipeline_mode<synchronous>, transform_indices = @transform_3, window_bounds = array<i64: 256, 128>}, {pipeline_mode = #tpu.pipeline_mode<synchronous>, transform_indices = @transform_4, window_bounds = array<i64: 1, 128>}, {pipeline_mode = #tpu.pipeline_mode<synchronous>, transform_indices = @transform_5, window_bounds = array<i64: 128, 64>}, {pipeline_mode = #tpu.pipeline_mode<synchronous>, transform_indices = @transform_6, window_bounds = array<i64: 1, 64>}, {pipeline_mode = #tpu.pipeline_mode<synchronous>, transform_indices = @transform_7, window_bounds = array<i64: 64, 128>}, {pipeline_mode = #tpu.pipeline_mode<synchronous>, transform_indices = @transform_8, window_bounds = array<i64: 1, 128>}, {transform_indices = @transform_9, window_bounds = array<i64: 8, 10>}]} {
    %c0 = arith.constant 0 : index
    %c0_0 = arith.constant 0 : index
    %0 = vector.load %arg1[%c0, %c0_0] : memref<8x784xf32, #tpu.memory_space<vmem>>, vector<8x784xf32>
    %1 = arith.truncf %0 : vector<8x784xf32> to vector<8x784xbf16>
    %c0_1 = arith.constant 0 : index
    %c0_2 = arith.constant 0 : index
    %2 = vector.load %arg2[%c0_1, %c0_2] : memref<784x256xbf16, #tpu.memory_space<vmem>>, vector<784x256xbf16>
    %cst = arith.constant dense<0.000000e+00> : vector<8x256xf32>
    %3 = tpu.matmul %1, %2, %cst {dimension_numbers = #tpu.dot_dimension_numbers<[1], [0], [0], [1], [0, 0, 1, 1], [], []>} : vector<8x784xbf16>, vector<784x256xbf16>, vector<8x256xf32> -> vector<8x256xf32>
    %c0_3 = arith.constant 0 : index
    %c0_4 = arith.constant 0 : index
    %4 = vector.load %arg3[%c0_3, %c0_4] : memref<1x256xf32, #tpu.memory_space<vmem>>, vector<1x256xf32>
    %5 = vector.broadcast %4 : vector<1x256xf32> to vector<8x256xf32>
    %6 = arith.addf %3, %5 : vector<8x256xf32>
    %cst_5 = arith.constant 0.000000e+00 : f32
    %7 = vector.broadcast %cst_5 : f32 to vector<8x256xf32>
    %8 = arith.maximumf %6, %7 : vector<8x256xf32>
    %9 = arith.truncf %8 : vector<8x256xf32> to vector<8x256xbf16>
    %c0_6 = arith.constant 0 : index
    %c0_7 = arith.constant 0 : index
    %10 = vector.load %arg4[%c0_6, %c0_7] : memref<256x128xbf16, #tpu.memory_space<vmem>>, vector<256x128xbf16>
    %cst_8 = arith.constant dense<0.000000e+00> : vector<8x128xf32>
    %11 = tpu.matmul %9, %10, %cst_8 {dimension_numbers = #tpu.dot_dimension_numbers<[1], [0], [0], [1], [0, 0, 1, 1], [], []>} : vector<8x256xbf16>, vector<256x128xbf16>, vector<8x128xf32> -> vector<8x128xf32>
    %c0_9 = arith.constant 0 : index
    %c0_10 = arith.constant 0 : index
    %12 = vector.load %arg5[%c0_9, %c0_10] : memref<1x128xf32, #tpu.memory_space<vmem>>, vector<1x128xf32>
    %13 = vector.broadcast %12 : vector<1x128xf32> to vector<8x128xf32>
    %14 = arith.addf %11, %13 : vector<8x128xf32>
    %cst_11 = arith.constant 0.000000e+00 : f32
    %15 = vector.broadcast %cst_11 : f32 to vector<8x128xf32>
    %16 = arith.maximumf %14, %15 : vector<8x128xf32>
    %17 = arith.truncf %16 : vector<8x128xf32> to vector<8x128xbf16>
    %c0_12 = arith.constant 0 : index
    %c0_13 = arith.constant 0 : index
    %18 = vector.load %arg6[%c0_12, %c0_13] : memref<128x64xbf16, #tpu.memory_space<vmem>>, vector<128x64xbf16>
    %cst_14 = arith.constant dense<0.000000e+00> : vector<8x64xf32>
    %19 = tpu.matmul %17, %18, %cst_14 {dimension_numbers = #tpu.dot_dimension_numbers<[1], [0], [0], [1], [0, 0, 1, 1], [], []>} : vector<8x128xbf16>, vector<128x64xbf16>, vector<8x64xf32> -> vector<8x64xf32>
    %c0_15 = arith.constant 0 : index
    %c0_16 = arith.constant 0 : index
    %20 = vector.load %arg7[%c0_15, %c0_16] : memref<1x64xf32, #tpu.memory_space<vmem>>, vector<1x64xf32>
    %21 = vector.broadcast %20 : vector<1x64xf32> to vector<8x64xf32>
    %22 = arith.addf %19, %21 : vector<8x64xf32>
    %cst_17 = arith.constant 0.000000e+00 : f32
    %23 = vector.broadcast %cst_17 : f32 to vector<8x64xf32>
    %24 = arith.maximumf %22, %23 : vector<8x64xf32>
    %25 = arith.truncf %24 : vector<8x64xf32> to vector<8x64xbf16>
    %c0_18 = arith.constant 0 : index
    %c0_19 = arith.constant 0 : index
    %26 = vector.load %arg8[%c0_18, %c0_19] : memref<64x128xbf16, #tpu.memory_space<vmem>>, vector<64x128xbf16>
    %cst_20 = arith.constant dense<0.000000e+00> : vector<8x128xf32>
    %27 = tpu.matmul %25, %26, %cst_20 {dimension_numbers = #tpu.dot_dimension_numbers<[1], [0], [0], [1], [0, 0, 1, 1], [], []>} : vector<8x64xbf16>, vector<64x128xbf16>, vector<8x128xf32> -> vector<8x128xf32>
    %c0_21 = arith.constant 0 : index
    %c0_22 = arith.constant 0 : index
    %28 = vector.load %arg9[%c0_21, %c0_22] : memref<1x128xf32, #tpu.memory_space<vmem>>, vector<1x128xf32>
    %29 = vector.broadcast %28 : vector<1x128xf32> to vector<8x128xf32>
    %30 = arith.addf %27, %29 : vector<8x128xf32>
    %cst_23 = arith.constant dense<0xFF800000> : vector<8xf32>
    %31 = vector.multi_reduction <maximumf>, %30, %cst_23 [1] : vector<8x128xf32> to vector<8xf32>
    %32 = vector.shape_cast %31 : vector<8xf32> to vector<8x1xf32>
    %33 = vector.broadcast %32 : vector<8x1xf32> to vector<8x128xf32>
    %34 = arith.subf %30, %33 : vector<8x128xf32>
    %35 = math.exp %34 : vector<8x128xf32>
    %cst_24 = arith.constant dense<0.000000e+00> : vector<8xf32>
    %36 = vector.multi_reduction <add>, %35, %cst_24 [1] : vector<8x128xf32> to vector<8xf32>
    %37 = vector.shape_cast %36 : vector<8xf32> to vector<8x1xf32>
    %38 = math.log %37 : vector<8x1xf32>
    %39 = vector.broadcast %38 : vector<8x1xf32> to vector<8x128xf32>
    %40 = arith.subf %34, %39 : vector<8x128xf32>
    %41 = vector.extract_strided_slice %40 {offsets = [0, 0], sizes = [8, 10], strides = [1, 1]} : vector<8x128xf32> to vector<8x10xf32>
    %c0_25 = arith.constant 0 : index
    %c0_26 = arith.constant 0 : index
    %42 = vector.load %arg10[%c0_25, %c0_26] : memref<8x10xf32, #tpu.memory_space<vmem>>, vector<8x10xf32>
    tpu.vector_store %arg10[%c0_25, %c0_26], %41 {strides = array<i32>} : memref<8x10xf32, #tpu.memory_space<vmem>>, vector<8x10xf32>,
    return
  }
  func.func @transform_0(%arg0: i32) -> (i32, i32) {
    %c0_i32 = arith.constant 0 : i32
    %c0_i32_0 = arith.constant 0 : i32
    return %arg0, %c0_i32 : i32, i32
  }
  func.func @transform_1(%arg0: i32) -> (i32, i32) {
    %c0_i32 = arith.constant 0 : i32
    %c0_i32_0 = arith.constant 0 : i32
    %c0_i32_1 = arith.constant 0 : i32
    return %c0_i32, %c0_i32_0 : i32, i32
  }
  func.func @transform_2(%arg0: i32) -> (i32, i32) {
    %c0_i32 = arith.constant 0 : i32
    %c0_i32_0 = arith.constant 0 : i32
    %c0_i32_1 = arith.constant 0 : i32
    return %c0_i32, %c0_i32_0 : i32, i32
  }
  func.func @transform_3(%arg0: i32) -> (i32, i32) {
    %c0_i32 = arith.constant 0 : i32
    %c0_i32_0 = arith.constant 0 : i32
    %c0_i32_1 = arith.constant 0 : i32
    return %c0_i32, %c0_i32_0 : i32, i32
  }
  func.func @transform_4(%arg0: i32) -> (i32, i32) {
    %c0_i32 = arith.constant 0 : i32
    %c0_i32_0 = arith.constant 0 : i32
    %c0_i32_1 = arith.constant 0 : i32
    return %c0_i32, %c0_i32_0 : i32, i32
  }
  func.func @transform_5(%arg0: i32) -> (i32, i32) {
    %c0_i32 = arith.constant 0 : i32
    %c0_i32_0 = arith.constant 0 : i32
    %c0_i32_1 = arith.constant 0 : i32
    return %c0_i32, %c0_i32_0 : i32, i32
  }
  func.func @transform_6(%arg0: i32) -> (i32, i32) {
    %c0_i32 = arith.constant 0 : i32
    %c0_i32_0 = arith.constant 0 : i32
    %c0_i32_1 = arith.constant 0 : i32
    return %c0_i32, %c0_i32_0 : i32, i32
  }
  func.func @transform_7(%arg0: i32) -> (i32, i32) {
    %c0_i32 = arith.constant 0 : i32
    %c0_i32_0 = arith.constant 0 : i32
    %c0_i32_1 = arith.constant 0 : i32
    return %c0_i32, %c0_i32_0 : i32, i32
  }
  func.func @transform_8(%arg0: i32) -> (i32, i32) {
    %c0_i32 = arith.constant 0 : i32
    %c0_i32_0 = arith.constant 0 : i32
    %c0_i32_1 = arith.constant 0 : i32
    return %c0_i32, %c0_i32_0 : i32, i32
  }
  func.func @transform_9(%arg0: i32) -> (i32, i32) {
    %c0_i32 = arith.constant 0 : i32
    %c0_i32_0 = arith.constant 0 : i32
    return %arg0, %c0_i32 : i32, i32
  }
}

</mosaic_0001>

<bundles_post_ra>
// kernel: tpu_custom_call.1
= control target key start
LH: loop header
LB: loop body
LE: loop exit
PB: predicated region body
PF: predicated region fallthrough
CT: control target
= control target key end

     0   :  { %14 = vsyncpa [#allocation3], 0  ;;  %s2080_s0 = inlined_call_operand.vmem [shape: f32[8,784], index: 0, kind: input, shape index: {}]   ;;  %s2081_s1 = inlined_call_operand.hbm [shape: bf16[784,256], index: 1, kind: input, shape index: {}]   ;;  %s2082_s2 = inlined_call_operand.vmem [shape: f32[1,256], index: 2, kind: input, shape index: {}]   ;;  %s2083_s3 = inlined_call_operand.hbm [shape: bf16[256,128], index: 3, kind: input, shape index: {}]   ;;  %s2084_s4 = inlined_call_operand.vmem [shape: f32[1,128], index: 4, kind: input, shape index: {}]   ;;  %s2085_s5 = inlined_call_operand.vmem [shape: bf16[128,64], index: 5, kind: input, shape index: {}]   ;;  %s2086_s6 = inlined_call_operand.vmem [shape: f32[1,64], index: 6, kind: input, shape index: {}]   ;;  %s2087_s7 = inlined_call_operand.vmem [shape: bf16[64,128], index: 7, kind: input, shape index: {}]   ;;  %s2088_s8 = inlined_call_operand.vmem [shape: f32[1,128], index: 8, kind: input, shape index: {}]   ;;  %s2089_s9 = inlined_call_operand.hbm [shape: f32[8,10], index: 9, kind: output, shape index: {}]  }
   0x1   :  { %15 = vsyncpa [#allocation6], 0 }
   0x2   :  { %16 = vsyncpa [#allocation4], 0  ;;  %s23_s11 = sshll.u32 %s2081_s1, 4  ;;  %s1915_s12 = smov [#allocation2]   ;;  %s24_s11 = int_to_ptr.hbm [resolvable:$true] %s23_s11 }
   0x3   :  { %s25_s13 = sshll.u32 %s1915_s12, 4  ;;  %s38_s16 = sshll.u32 %s2083_s3, 4  ;;  %s26_s13 = int_to_ptr.vmem [resolvable:$true] %s25_s13  ;;  %s39_s16 = int_to_ptr.hbm [resolvable:$true] %s38_s16 }
   0x4   :  { %s1916_s17 = smov 128   ;;  %s1917_s18 = smov 8  }
   0x5   :  { %31 = dma.hbm_to_vmem [thread:$0]  %s24_s11, 12544, %s26_s13, [#allocation3], %s1916_s17, %s1916_s17, %s1917_s18  }
   0x6   :  { %s1918_s19 = smov [#allocation5]   ;;  %s1919_s21 = smov 64  }
   0x7   :  { %s40_s20 = sshll.u32 %s1918_s19, 4  ;;  %s1920_s22 = smov 4   ;;  %s41_s20 = int_to_ptr.vmem [resolvable:$true] %s40_s20 }
   0x8   :  { %46 = dma.hbm_to_vmem [thread:$0]  %s39_s16, 2048, %s41_s20, [#allocation6], %s1919_s21, %s1919_s21, %s1920_s22  }
   0x9   :  { %1909 = dma.done.wait [#allocation3], 12544  }
   0xa   :  { %1910 = vsyncadd [#allocation3], 4294954752 }
   0xb   :  { %1911 = dma.done.wait [#allocation6], 2048  }
   0xc   :  { %1912 = vsyncadd [#allocation6], 4294965248  ;;  %v1248_v0 = vld [vmem:[#allocation2 + $0x70] sm:$0xf]  ;;  %v1712_v1 = vld [vmem:[#allocation2 + $0x74] sm:$0xf0] }
   0xd   :  { %v1376_v2 = vld [vmem:[#allocation2 + $0x170] sm:$0xf]  ;;  %v1249_v3 = vor.u32 %v1712_v1, %v1248_v0  ;;  %v1744_v4 = vld [vmem:[#allocation2 + $0x174] sm:$0xf0]  ;;  %v1240_v11 = vld [vmem:[#allocation2 + $0x60] sm:$0xf] }
   0xe   :  { %v1440_v5 = vld [vmem:[#allocation2 + $0x1f0] sm:$0xf]  ;;  %v1760_v6 = vld [vmem:[#allocation2 + $0x1f4] sm:$0xf0]  ;;  %v1377_v7 = vor.u32 %v1744_v4, %v1376_v2  ;;  %v1710_v13 = vld [vmem:[#allocation2 + $0x64] sm:$0xf0] }
   0xf   :  { %v1441_v8 = vor.u32 %v1760_v6, %v1440_v5  ;;  %v1312_v9 = vld [vmem:[#allocation2 + $0xf0] sm:$0xf]  ;;  %v1728_v10 = vld [vmem:[#allocation2 + $0xf4] sm:$0xf0]  ;;  %678 = vmatpush.bf16.msra.mxu0 %v1249_v3  ;;  %v1368_v14 = vld [vmem:[#allocation2 + $0x160] sm:$0xf]  ;;  %v1241_v16 = vor.u32 %v1710_v13, %v1240_v11 }
  0x10   :  { %v1313_v12 = vor.u32 %v1728_v10, %v1312_v9  ;;  %v1742_v15 = vld [vmem:[#allocation2 + $0x164] sm:$0xf0]  ;;  %704 = vmatpush.bf16.msra.mxu2 %v1377_v7  ;;  %v1432_v18 = vld [vmem:[#allocation2 + $0x1e0] sm:$0xf]  ;;  %v1232_v23 = vld [vmem:[#allocation2 + $0x50] sm:$0xf] }
  0x11   :  { %717 = vmatpush.bf16.msra.mxu3 %v1441_v8  ;;  %v1369_v17 = vor.u32 %v1742_v15, %v1368_v14  ;;  %v1758_v19 = vld [vmem:[#allocation2 + $0x1e4] sm:$0xf0]  ;;  %v1304_v20 = vld [vmem:[#allocation2 + $0xe0] sm:$0xf]  ;;  %v1708_v24 = vld [vmem:[#allocation2 + $0x54] sm:$0xf0] }
  0x12   :  { %691 = vmatpush.bf16.msra.mxu1 %v1313_v12  ;;  %v1433_v21 = vor.u32 %v1758_v19, %v1432_v18  ;;  %v1726_v22 = vld [vmem:[#allocation2 + $0xe4] sm:$0xf0]  ;;  %v1360_v26 = vld [vmem:[#allocation2 + $0x150] sm:$0xf]  ;;  %v1740_v27 = vld [vmem:[#allocation2 + $0x154] sm:$0xf0]  ;;  %v1233_v29 = vor.u32 %v1708_v24, %v1232_v23 }
  0x13   :  { %v1305_v25 = vor.u32 %v1726_v22, %v1304_v20  ;;  %v1424_v28 = vld [vmem:[#allocation2 + $0x1d0] sm:$0xf]  ;;  %679 = vmatpush.bf16.msra.mxu0 %v1241_v16  ;;  %v1756_v30 = vld [vmem:[#allocation2 + $0x1d4] sm:$0xf0]  ;;  %v1361_v33 = vor.u32 %v1740_v27, %v1360_v26  ;;  %v1224_v35 = vld [vmem:[#allocation2 + $0x40] sm:$0xf] }
  0x14   :  { %v1296_v31 = vld [vmem:[#allocation2 + $0xd0] sm:$0xf]  ;;  %v1724_v32 = vld [vmem:[#allocation2 + $0xd4] sm:$0xf0]  ;;  %705 = vmatpush.bf16.msra.mxu2 %v1369_v17  ;;  %v1425_v34 = vor.u32 %v1756_v30, %v1424_v28  ;;  %v1706_v36 = vld [vmem:[#allocation2 + $0x44] sm:$0xf0] }
  0x15   :  { %718 = vmatpush.bf16.msra.mxu3 %v1433_v21  ;;  %v1352_v37 = vld [vmem:[#allocation2 + $0x140] sm:$0xf]  ;;  %v1297_v38 = vor.u32 %v1724_v32, %v1296_v31  ;;  %v1738_v39 = vld [vmem:[#allocation2 + $0x144] sm:$0xf0]  ;;  %v1225_v44 = vor.u32 %v1706_v36, %v1224_v35  ;;  %v1216_v47 = vld [vmem:[#allocation2 + $0x30] sm:$0xf] }
  0x16   :  { %692 = vmatpush.bf16.msra.mxu1 %v1305_v25  ;;  %v1416_v40 = vld [vmem:[#allocation2 + $0x1c0] sm:$0xf]  ;;  %v1754_v41 = vld [vmem:[#allocation2 + $0x1c4] sm:$0xf0]  ;;  %v1353_v45 = vor.u32 %v1738_v39, %v1352_v37  ;;  %v1704_v48 = vld [vmem:[#allocation2 + $0x34] sm:$0xf0] }
  0x17   :  { %v1288_v42 = vld [vmem:[#allocation2 + $0xc0] sm:$0xf]  ;;  %v1722_v43 = vld [vmem:[#allocation2 + $0xc4] sm:$0xf0]  ;;  %680 = vmatpush.bf16.msra.mxu0 %v1233_v29  ;;  %v1417_v46 = vor.u32 %v1754_v41, %v1416_v40  ;;  %v1344_v49 = vld [vmem:[#allocation2 + $0x130] sm:$0xf]  ;;  %v1217_v56 = vor.u32 %v1704_v48, %v1216_v47 }
  0x18   :  { %706 = vmatpush.bf16.msra.mxu2 %v1361_v33  ;;  %v1289_v50 = vor.u32 %v1722_v43, %v1288_v42  ;;  %v1736_v51 = vld [vmem:[#allocation2 + $0x134] sm:$0xf0]  ;;  %v1408_v52 = vld [vmem:[#allocation2 + $0x1b0] sm:$0xf]  ;;  %v1208_v59 = vld [vmem:[#allocation2 + $0x20] sm:$0xf] }
  0x19   :  { %719 = vmatpush.bf16.msra.mxu3 %v1425_v34  ;;  %v1752_v53 = vld [vmem:[#allocation2 + $0x1b4] sm:$0xf0]  ;;  %v1280_v54 = vld [vmem:[#allocation2 + $0xb0] sm:$0xf]  ;;  %v1345_v57 = vor.u32 %v1736_v51, %v1344_v49  ;;  %v1702_v60 = vld [vmem:[#allocation2 + $0x24] sm:$0xf0] }
  0x1a   :  { %693 = vmatpush.bf16.msra.mxu1 %v1297_v38  ;;  %v1720_v55 = vld [vmem:[#allocation2 + $0xb4] sm:$0xf0]  ;;  %v1409_v58 = vor.u32 %v1752_v53, %v1408_v52  ;;  %v1336_v61 = vld [vmem:[#allocation2 + $0x120] sm:$0xf]  ;;  %v1734_v63 = vld [vmem:[#allocation2 + $0x124] sm:$0xf0]  ;;  %v1209_v4 = vor.u32 %v1702_v60, %v1208_v59 }
  0x1b   :  { %681 = vmatpush.bf16.msra.mxu0 %v1225_v44  ;;  %v1281_v62 = vor.u32 %v1720_v55, %v1280_v54  ;;  %v1400_v0 = vld [vmem:[#allocation2 + $0x1a0] sm:$0xf]  ;;  %v1750_v1 = vld [vmem:[#allocation2 + $0x1a4] sm:$0xf0]  ;;  %v1337_v5 = vor.u32 %v1734_v63, %v1336_v61  ;;  %v1200_v7 = vld [vmem:[#allocation2 + $0x10] sm:$0xf] }
  0x1c   :  { %707 = vmatpush.bf16.msra.mxu2 %v1353_v45  ;;  %v1272_v2 = vld [vmem:[#allocation2 + $0xa0] sm:$0xf]  ;;  %v1718_v3 = vld [vmem:[#allocation2 + $0xa4] sm:$0xf0]  ;;  %v1401_v6 = vor.u32 %v1750_v1, %v1400_v0  ;;  %v1700_v8 = vld [vmem:[#allocation2 + $0x14] sm:$0xf0] }
  0x1d   :  { %720 = vmatpush.bf16.msra.mxu3 %v1417_v46  ;;  %v1328_v9 = vld [vmem:[#allocation2 + $0x110] sm:$0xf]  ;;  %v1273_v10 = vor.u32 %v1718_v3, %v1272_v2  ;;  %v1732_v11 = vld [vmem:[#allocation2 + $0x114] sm:$0xf0]  ;;  %v1201_v16 = vor.u32 %v1700_v8, %v1200_v7  ;;  %v1192_v17 = vld [vmem:[#allocation2] sm:$0xf] }
  0x1e   :  { %694 = vmatpush.bf16.msra.mxu1 %v1289_v50  ;;  %v1392_v12 = vld [vmem:[#allocation2 + $0x190] sm:$0xf]  ;;  %v1748_v13 = vld [vmem:[#allocation2 + $0x194] sm:$0xf0]  ;;  %v1698_v18 = vld [vmem:[#allocation2 + $0x4] sm:$0xf0]  ;;  %v1329_v20 = vor.u32 %v1732_v11, %v1328_v9 }
  0x1f   :  { %682 = vmatpush.bf16.msra.mxu0 %v1217_v56  ;;  %v1264_v14 = vld [vmem:[#allocation2 + $0x90] sm:$0xf]  ;;  %v1716_v15 = vld [vmem:[#allocation2 + $0x94] sm:$0xf0]  ;;  %v1320_v19 = vld [vmem:[#allocation2 + $0x100] sm:$0xf]  ;;  %v1393_v21 = vor.u32 %v1748_v13, %v1392_v12  ;;  %v1193_v32 = vor.u32 %v1698_v18, %v1192_v17 }
  0x20   :  { %708 = vmatpush.bf16.msra.mxu2 %v1345_v57  ;;  %v1730_v22 = vld [vmem:[#allocation2 + $0x104] sm:$0xf0]  ;;  %v1384_v23 = vld [vmem:[#allocation2 + $0x180] sm:$0xf]  ;;  %v1265_v25 = vor.u32 %v1716_v15, %v1264_v14  ;;  %v1504_v26 = vld [vmem:[#allocation2 + $0x270] sm:$0xf] }
  0x21   :  { %721 = vmatpush.bf16.msra.mxu3 %v1409_v58  ;;  %v1746_v24 = vld [vmem:[#allocation2 + $0x184] sm:$0xf0]  ;;  %v1776_v27 = vld [vmem:[#allocation2 + $0x274] sm:$0xf0]  ;;  %v1711_v28 = vld [vmem:[#allocation2 + $0x74] sm:$0xf]  ;;  %v1321_v36 = vor.u32 %v1730_v22, %v1320_v19 }
  0x22   :  { %695 = vmatpush.bf16.msra.mxu1 %v1281_v62  ;;  %v1250_v29 = vld [vmem:[#allocation2 + $0x78] sm:$0xf0]  ;;  %v1256_v30 = vld [vmem:[#allocation2 + $0x80] sm:$0xf]  ;;  %v1714_v31 = vld [vmem:[#allocation2 + $0x84] sm:$0xf0]  ;;  %v1385_v37 = vor.u32 %v1746_v24, %v1384_v23  ;;  %v1505_v41 = vor.u32 %v1776_v27, %v1504_v26 }
  0x23   :  { %683 = vmatpush.bf16.msra.mxu0 %v1209_v4  ;;  %v68_v33 = vld [vmem:[%s2080_s0 + $0x10] sm:$0xff]  ;;  %v1576_v34 = vld [vmem:[#allocation2 + $0x300] sm:$0xf]  ;;  %v1794_v35 = vld [vmem:[#allocation2 + $0x304] sm:$0xf0]  ;;  %v1253_v42 = vor.u32 %v1711_v28, %v1250_v29  ;;  %v1257_v46 = vor.u32 %v1714_v31, %v1256_v30  ;;  %vm674_vm0 = vcmask 130048  }
  0x24   :  { %709 = vmatpush.bf16.msra.mxu2 %v1337_v5  ;;  %v1568_v38 = vld [vmem:[#allocation2 + $0x2f0] sm:$0xf]  ;;  %v1792_v39 = vld [vmem:[#allocation2 + $0x2f4] sm:$0xf0]  ;;  %v1727_v40 = vld [vmem:[#allocation2 + $0xf4] sm:$0xf]  ;;  %v1577_v47 = vor.u32 %v1794_v35, %v1576_v34  ;;  %v1984_v51 = vpack.c.bf16 %v68_v33, %v68_v33 }
  0x25   :  { %722 = vmatpush.bf16.msra.mxu3 %v1401_v6  ;;  %v1314_v43 = vld [vmem:[#allocation2 + $0xf8] sm:$0xf0]  ;;  %v1496_v44 = vld [vmem:[#allocation2 + $0x260] sm:$0xf]  ;;  %v1774_v48 = vld [vmem:[#allocation2 + $0x264] sm:$0xf0]  ;;  %v1569_v52 = vor.u32 %v1792_v39, %v1568_v38 }
  0x26   :  { %696 = vmatpush.bf16.msra.mxu1 %v1273_v10  ;;  %v66_v45 = vld [vmem:[%s2080_s0] sm:$0xff]  ;;  %v1242_v50 = vld [vmem:[#allocation2 + $0x68] sm:$0xf0]  ;;  %v69_v53 = vld [vmem:[%s2080_s0 + $0x18] sm:$0xff]  ;;  %v1317_v55 = vor.u32 %v1727_v40, %v1314_v43  ;;  %v1497_v59 = vor.u32 %v1774_v48, %v1496_v44  ;;  %vm1143_vm1 = vcmask 523264   ;;  %s1179_s19 = sshll.u32 %s2089_s9, 4  ;;  %s1180_s19 = int_to_ptr.hbm [resolvable:$true] %s1179_s19 }
  0x27   :  { %684 = vmatpush.bf16.msra.mxu0 %v1201_v16  ;;  %v1709_v49 = vld [vmem:[#allocation2 + $0x64] sm:$0xf]  ;;  %v67_v54 = vld [vmem:[%s2080_s0 + $0x8] sm:$0xff]  ;;  %v1560_v56 = vld [vmem:[#allocation2 + $0x2e0] sm:$0xf]  ;;  %v1992_v58 = vpack.c.bf16 %v66_v45, %v66_v45  ;;  %v1994_v3 = vpack.c.bf16 %v69_v53, %v69_v53  ;;  %vm1170_vm2 = vcmask 80896  }
  0x28   :  { %710 = vmatpush.bf16.msra.mxu2 %v1329_v20  ;;  %v1790_v57 = vld [vmem:[#allocation2 + $0x2e4] sm:$0xf0]  ;;  %v1245_v60 = vor.u32 %v1709_v49, %v1242_v50  ;;  %v1725_v61 = vld [vmem:[#allocation2 + $0xe4] sm:$0xf]  ;;  %v1306_v62 = vld [vmem:[#allocation2 + $0xe8] sm:$0xf0]  ;;  %v1996_v4 = vpack.c.bf16 %v67_v54, %v67_v54 }
  0x29   :  { %723 = vmatpush.bf16.msra.mxu3 %v1393_v21  ;;  %v1488_v63 = vld [vmem:[#allocation2 + $0x250] sm:$0xf]  ;;  %v1772_v0 = vld [vmem:[#allocation2 + $0x254] sm:$0xf0]  ;;  %v1707_v1 = vld [vmem:[#allocation2 + $0x54] sm:$0xf]  ;;  %v1561_v5 = vor.u32 %v1790_v57, %v1560_v56  ;;  %v1309_v6 = vor.u32 %v1725_v61, %v1306_v62 }
  0x2a   :  { %697 = vmatpush.bf16.msra.mxu1 %v1265_v25  ;;  %v1234_v2 = vld [vmem:[#allocation2 + $0x58] sm:$0xf0]  ;;  %v1552_v7 = vld [vmem:[#allocation2 + $0x2d0] sm:$0xf]  ;;  %v1788_v8 = vld [vmem:[#allocation2 + $0x2d4] sm:$0xf0]  ;;  %v1489_v9 = vor.u32 %v1772_v0, %v1488_v63 }
  0x2b   :  { %685 = vmatpush.bf16.msra.mxu0 %v1193_v32  ;;  %v1237_v10 = vor.u32 %v1707_v1, %v1234_v2  ;;  %v1723_v11 = vld [vmem:[#allocation2 + $0xd4] sm:$0xf]  ;;  %v1298_v12 = vld [vmem:[#allocation2 + $0xd8] sm:$0xf0]  ;;  %v1480_v13 = vld [vmem:[#allocation2 + $0x240] sm:$0xf]  ;;  %v1553_v17 = vor.u32 %v1788_v8, %v1552_v7 }
  0x2c   :  { %711 = vmatpush.bf16.msra.mxu2 %v1321_v36  ;;  %v1770_v14 = vld [vmem:[#allocation2 + $0x244] sm:$0xf0]  ;;  %v1705_v15 = vld [vmem:[#allocation2 + $0x44] sm:$0xf]  ;;  %v1226_v16 = vld [vmem:[#allocation2 + $0x48] sm:$0xf0]  ;;  %v1301_v18 = vor.u32 %v1723_v11, %v1298_v12 }
  0x2d   :  { %724 = vmatpush.bf16.msra.mxu3 %v1385_v37  ;;  %v1544_v19 = vld [vmem:[#allocation2 + $0x2c0] sm:$0xf]  ;;  %v1786_v20 = vld [vmem:[#allocation2 + $0x2c4] sm:$0xf0]  ;;  %v1481_v21 = vor.u32 %v1770_v14, %v1480_v13  ;;  %v1229_v22 = vor.u32 %v1705_v15, %v1226_v16  ;;  %v1721_v23 = vld [vmem:[#allocation2 + $0xc4] sm:$0xf] }
  0x2e   :  { %698 = vmatpush.bf16.msra.mxu1 %v1257_v46  ;;  %686 = vmatmul.bf16.vlgmr.msra.gmra.mxu0 %v1992_v58  ;;  %v1290_v24 = vld [vmem:[#allocation2 + $0xc8] sm:$0xf0]  ;;  %v1472_v25 = vld [vmem:[#allocation2 + $0x230] sm:$0xf]  ;;  %v1768_v26 = vld [vmem:[#allocation2 + $0x234] sm:$0xf0]  ;;  %v1545_v29 = vor.u32 %v1786_v20, %v1544_v19 }
  0x2f   :  { %730 = vmatpush.bf16.msrb.mxu0 %v1505_v41  ;;  %712 = vmatmul.bf16.vlgmr.msra.gmra.mxu2 %v1984_v51  ;;  %v1703_v27 = vld [vmem:[#allocation2 + $0x34] sm:$0xf]  ;;  %v1218_v28 = vld [vmem:[#allocation2 + $0x38] sm:$0xf0]  ;;  %v1293_v30 = vor.u32 %v1721_v23, %v1290_v24  ;;  %v1536_v31 = vld [vmem:[#allocation2 + $0x2b0] sm:$0xf]  ;;  %v1473_v34 = vor.u32 %v1768_v26, %v1472_v25 }
  0x30   :  { %763 = vmatpush.bf16.msrb.mxu2 %v1577_v47  ;;  %725 = vmatmul.bf16.vlgmr.msra.gmra.mxu3 %v1994_v3  ;;  %v1784_v32 = vld [vmem:[#allocation2 + $0x2b4] sm:$0xf0]  ;;  %v72_v33 = vld [vmem:[%s2080_s0 + $0x30] sm:$0xff]  ;;  %v1221_v35 = vor.u32 %v1703_v27, %v1218_v28  ;;  %v1282_v37 = vld [vmem:[#allocation2 + $0xb8] sm:$0xf0] }
  0x31   :  { %769 = vmatpush.bf16.msrb.mxu3 %v1253_v42  ;;  %699 = vmatmul.bf16.vlgmr.msra.gmra.mxu1 %v1996_v4  ;;  %v1719_v36 = vld [vmem:[#allocation2 + $0xb4] sm:$0xf]  ;;  %v1464_v38 = vld [vmem:[#allocation2 + $0x220] sm:$0xf]  ;;  %v1766_v39 = vld [vmem:[#allocation2 + $0x224] sm:$0xf0]  ;;  %v1537_v42 = vor.u32 %v1784_v32, %v1536_v31  ;;  %v2005_v43 = vpack.c.bf16 %v72_v33, %v72_v33 }
  0x32   :  { %743 = vmatpush.bf16.msrb.mxu1 %v1569_v52  ;;  %v1701_v40 = vld [vmem:[#allocation2 + $0x24] sm:$0xf]  ;;  %v1210_v41 = vld [vmem:[#allocation2 + $0x28] sm:$0xf0]  ;;  %v1285_v44 = vor.u32 %v1719_v36, %v1282_v37  ;;  %v1528_v45 = vld [vmem:[#allocation2 + $0x2a0] sm:$0xf]  ;;  %v1465_v47 = vor.u32 %v1766_v39, %v1464_v38 }
  0x33   :  { %731 = vmatpush.bf16.msrb.mxu0 %v1497_v59  ;;  %v1782_v46 = vld [vmem:[#allocation2 + $0x2a4] sm:$0xf0]  ;;  %v1213_v48 = vor.u32 %v1701_v40, %v1210_v41  ;;  %v1717_v49 = vld [vmem:[#allocation2 + $0xa4] sm:$0xf]  ;;  %v1274_v50 = vld [vmem:[#allocation2 + $0xa8] sm:$0xf0] }
  0x34   :  { %782 = vmatpush.bf16.msra.mxu2 %v1317_v55  ;;  %v1456_v52 = vld [vmem:[#allocation2 + $0x210] sm:$0xf]  ;;  %v1764_v53 = vld [vmem:[#allocation2 + $0x214] sm:$0xf0]  ;;  %v1699_v54 = vld [vmem:[#allocation2 + $0x14] sm:$0xf]  ;;  %v1529_v56 = vor.u32 %v1782_v46, %v1528_v45  ;;  %v1277_v57 = vor.u32 %v1717_v49, %v1274_v50 }
  0x35   :  { %770 = vmatpush.bf16.msrb.mxu3 %v1245_v60  ;;  %v1202_v55 = vld [vmem:[#allocation2 + $0x18] sm:$0xf0]  ;;  %v1520_v59 = vld [vmem:[#allocation2 + $0x290] sm:$0xf]  ;;  %v1780_v60 = vld [vmem:[#allocation2 + $0x294] sm:$0xf0]  ;;  %v1457_v62 = vor.u32 %v1764_v53, %v1456_v52 }
  0x36   :  { %744 = vmatpush.bf16.msrb.mxu1 %v1561_v5  ;;  %v1715_v61 = vld [vmem:[#allocation2 + $0x94] sm:$0xf]  ;;  %v1205_v63 = vor.u32 %v1699_v54, %v1202_v55  ;;  %v1266_v0 = vld [vmem:[#allocation2 + $0x98] sm:$0xf0]  ;;  %v1448_v1 = vld [vmem:[#allocation2 + $0x200] sm:$0xf]  ;;  %v1521_v8 = vor.u32 %v1780_v60, %v1520_v59 }
  0x37   :  { %732 = vmatpush.bf16.msrb.mxu0 %v1489_v9  ;;  %v1762_v2 = vld [vmem:[#allocation2 + $0x204] sm:$0xf0]  ;;  %v1697_v5 = vld [vmem:[#allocation2 + $0x4] sm:$0xf]  ;;  %v1743_v7 = vld [vmem:[#allocation2 + $0x174] sm:$0xf]  ;;  %v1269_v12 = vor.u32 %v1715_v61, %v1266_v0 }
  0x38   :  { %783 = vmatpush.bf16.msra.mxu2 %v1309_v6  ;;  %v1194_v6 = vld [vmem:[#allocation2 + $0x8] sm:$0xf0]  ;;  %v1378_v9 = vld [vmem:[#allocation2 + $0x178] sm:$0xf0]  ;;  %v1512_v13 = vld [vmem:[#allocation2 + $0x280] sm:$0xf]  ;;  %v1449_v16 = vor.u32 %v1762_v2, %v1448_v1 }
  0x39   :  { %771 = vmatpush.bf16.msrb.mxu3 %v1237_v10  ;;  %v1775_v10 = vld [vmem:[#allocation2 + $0x274] sm:$0xf]  ;;  %v1506_v11 = vld [vmem:[#allocation2 + $0x278] sm:$0xf0]  ;;  %v1778_v14 = vld [vmem:[#allocation2 + $0x284] sm:$0xf0] }
  0x3a   :  { %745 = vmatpush.bf16.msrb.mxu1 %v1553_v17  ;;  %v70_v15 = vld [vmem:[%s2080_s0 + $0x20] sm:$0xff]  ;;  %v1197_v17 = vor.u32 %v1697_v5, %v1194_v6  ;;  %v1258_v19 = vld [vmem:[#allocation2 + $0x88] sm:$0xf0]  ;;  %v1759_v20 = vld [vmem:[#allocation2 + $0x1f4] sm:$0xf]  ;;  %v1513_v26 = vor.u32 %v1778_v14, %v1512_v13 }
  0x3b   :  { %733 = vmatpush.bf16.msrb.mxu0 %v1481_v21  ;;  %v1381_v21 = vor.u32 %v1743_v7, %v1378_v9  ;;  %v1442_v23 = vld [vmem:[#allocation2 + $0x1f8] sm:$0xf0]  ;;  %v1791_v24 = vld [vmem:[#allocation2 + $0x2f4] sm:$0xf]  ;;  %v71_v27 = vld [vmem:[%s2080_s0 + $0x28] sm:$0xff] }
  0x3c   :  { %784 = vmatpush.bf16.msra.mxu2 %v1301_v18  ;;  %v1713_v18 = vld [vmem:[#allocation2 + $0x84] sm:$0xf]  ;;  %v1570_v25 = vld [vmem:[#allocation2 + $0x2f8] sm:$0xf0]  ;;  %v1498_v33 = vld [vmem:[#allocation2 + $0x268] sm:$0xf0]  ;;  %v2017_v37 = vpack.c.bf16 %v71_v27, %v71_v27 }
  0x3d   :  { %772 = vmatpush.bf16.msrb.mxu3 %v1229_v22  ;;  %v1509_v22 = vor.u32 %v1775_v10, %v1506_v11  ;;  %v1741_v28 = vld [vmem:[#allocation2 + $0x164] sm:$0xf]  ;;  %v1261_v31 = vor.u32 %v1713_v18, %v1258_v19  ;;  %v1434_v39 = vld [vmem:[#allocation2 + $0x1e8] sm:$0xf0]  ;;  %v1362_v45 = vld [vmem:[#allocation2 + $0x158] sm:$0xf0] }
  0x3e   :  { %746 = vmatpush.bf16.msrb.mxu1 %v1545_v29  ;;  %v1370_v29 = vld [vmem:[#allocation2 + $0x168] sm:$0xf0]  ;;  %v1773_v32 = vld [vmem:[#allocation2 + $0x264] sm:$0xf]  ;;  %v1771_v46 = vld [vmem:[#allocation2 + $0x254] sm:$0xf] }
  0x3f   :  { %734 = vmatpush.bf16.msrb.mxu0 %v1473_v34  ;;  %1582 = vmatmul.msk.bf16.vlgmr.msrb.gmra.mxu2 %vm674_vm0, %v2005_v43  ;;  %v1445_v34 = vor.u32 %v1759_v20, %v1442_v23  ;;  %v1757_v36 = vld [vmem:[#allocation2 + $0x1e4] sm:$0xf]  ;;  %v1373_v38 = vor.u32 %v1741_v28, %v1370_v29  ;;  %v1562_v41 = vld [vmem:[#allocation2 + $0x2e8] sm:$0xf0]  ;;  %v1755_v50 = vld [vmem:[#allocation2 + $0x1d4] sm:$0xf] }
  0x40   :  { %785 = vmatpush.bf16.msra.mxu2 %v1293_v30  ;;  %v2015_v30 = vpack.c.bf16 %v70_v15, %v70_v15  ;;  %v1789_v40 = vld [vmem:[#allocation2 + $0x2e4] sm:$0xf]  ;;  %v1426_v52 = vld [vmem:[#allocation2 + $0x1d8] sm:$0xf0]  ;;  %v1787_v54 = vld [vmem:[#allocation2 + $0x2d4] sm:$0xf] }
  0x41   :  { %773 = vmatpush.bf16.msrb.mxu3 %v1221_v35  ;;  %v1573_v35 = vor.u32 %v1791_v24, %v1570_v25  ;;  %v1565_v49 = vor.u32 %v1789_v40, %v1562_v41  ;;  %v1554_v55 = vld [vmem:[#allocation2 + $0x2d8] sm:$0xf0]  ;;  %v1354_v59 = vld [vmem:[#allocation2 + $0x148] sm:$0xf0]  ;;  %v1769_v60 = vld [vmem:[#allocation2 + $0x244] sm:$0xf] }
  0x42   :  { %747 = vmatpush.bf16.msrb.mxu1 %v1537_v42  ;;  %v1501_v42 = vor.u32 %v1773_v32, %v1498_v33  ;;  %v1482_v61 = vld [vmem:[#allocation2 + $0x248] sm:$0xf0]  ;;  %v1753_v0 = vld [vmem:[#allocation2 + $0x1c4] sm:$0xf]  ;;  %v1346_v9 = vld [vmem:[#allocation2 + $0x138] sm:$0xf0] }
  0x43   :  { %735 = vmatpush.bf16.msrb.mxu0 %v1465_v47  ;;  %v1490_v47 = vld [vmem:[#allocation2 + $0x258] sm:$0xf0]  ;;  %v1418_v2 = vld [vmem:[#allocation2 + $0x1c8] sm:$0xf0]  ;;  %v1785_v5 = vld [vmem:[#allocation2 + $0x2c4] sm:$0xf]  ;;  %v1485_v7 = vor.u32 %v1769_v60, %v1482_v61 }
  0x44   :  { %786 = vmatpush.bf16.msra.mxu2 %v1285_v44  ;;  %v1739_v44 = vld [vmem:[#allocation2 + $0x154] sm:$0xf]  ;;  %v1546_v6 = vld [vmem:[#allocation2 + $0x2c8] sm:$0xf0]  ;;  %v1474_v11 = vld [vmem:[#allocation2 + $0x238] sm:$0xf0] }
  0x45   :  { %774 = vmatpush.bf16.msrb.mxu3 %v1213_v48  ;;  %v1437_v48 = vor.u32 %v1757_v36, %v1434_v39  ;;  %v1365_v53 = vor.u32 %v1739_v44, %v1362_v45  ;;  %v1767_v10 = vld [vmem:[#allocation2 + $0x234] sm:$0xf]  ;;  %v1410_v14 = vld [vmem:[#allocation2 + $0x1b8] sm:$0xf0]  ;;  %v1733_v18 = vld [vmem:[#allocation2 + $0x124] sm:$0xf] }
  0x46   :  { %748 = vmatpush.bf16.msrb.mxu1 %v1529_v56  ;;  %v1737_v56 = vld [vmem:[#allocation2 + $0x144] sm:$0xf]  ;;  %v1783_v15 = vld [vmem:[#allocation2 + $0x2b4] sm:$0xf]  ;;  %v1338_v19 = vld [vmem:[#allocation2 + $0x128] sm:$0xf0] }
  0x47   :  { %736 = vmatpush.bf16.msrb.mxu0 %v1457_v62  ;;  %v1429_v62 = vor.u32 %v1755_v50, %v1426_v52  ;;  %v1357_v1 = vor.u32 %v1737_v56, %v1354_v59  ;;  %v1765_v20 = vld [vmem:[#allocation2 + $0x224] sm:$0xf]  ;;  %v1341_v25 = vor.u32 %v1733_v18, %v1338_v19  ;;  %v1530_v28 = vld [vmem:[#allocation2 + $0x2a8] sm:$0xf0]  ;;  %v1330_v32 = vld [vmem:[#allocation2 + $0x118] sm:$0xf0] }
  0x48   :  { %787 = vmatpush.bf16.msra.mxu2 %v1277_v57  ;;  %v1493_v57 = vor.u32 %v1771_v46, %v1490_v47  ;;  %v1749_v24 = vld [vmem:[#allocation2 + $0x1a4] sm:$0xf]  ;;  %v1763_v33 = vld [vmem:[#allocation2 + $0x214] sm:$0xf]  ;;  %v1394_v40 = vld [vmem:[#allocation2 + $0x198] sm:$0xf0] }
  0x49   :  { %775 = vmatpush.bf16.msrb.mxu3 %v1205_v63  ;;  %v1557_v63 = vor.u32 %v1787_v54, %v1554_v55  ;;  %v1781_v27 = vld [vmem:[#allocation2 + $0x2a4] sm:$0xf]  ;;  %v1779_v41 = vld [vmem:[#allocation2 + $0x294] sm:$0xf]  ;;  %v1322_v46 = vld [vmem:[#allocation2 + $0x108] sm:$0xf0] }
  0x4a   :  { %749 = vmatpush.bf16.msrb.mxu1 %v1521_v8  ;;  %v1735_v8 = vld [vmem:[#allocation2 + $0x134] sm:$0xf]  ;;  %v1533_v36 = vor.u32 %v1781_v27, %v1530_v28  ;;  %v1729_v45 = vld [vmem:[#allocation2 + $0x104] sm:$0xf]  ;;  %v1578_v50 = vld [vmem:[#allocation2 + $0x308] sm:$0xf0] }
  0x4b   :  { %737 = vmatpush.bf16.msrb.mxu0 %v1449_v16  ;;  %v1349_v13 = vor.u32 %v1735_v8, %v1346_v9  ;;  %v1538_v16 = vld [vmem:[#allocation2 + $0x2b8] sm:$0xf0]  ;;  %v1761_v47 = vld [vmem:[#allocation2 + $0x204] sm:$0xf]  ;;  %v1325_v54 = vor.u32 %v1729_v45, %v1322_v46  ;;  %v1386_v56 = vld [vmem:[#allocation2 + $0x188] sm:$0xf0] }
  0x4c   :  { %788 = vmatpush.bf16.msra.mxu2 %v1269_v12  ;;  %v1751_v12 = vld [vmem:[#allocation2 + $0x1b4] sm:$0xf]  ;;  %v1541_v23 = vor.u32 %v1783_v15, %v1538_v16  ;;  %v1745_v55 = vld [vmem:[#allocation2 + $0x184] sm:$0xf]  ;;  %v1514_v60 = vld [vmem:[#allocation2 + $0x288] sm:$0xf0] }
  0x4d   :  { %776 = vmatpush.bf16.msrb.mxu3 %v1197_v17  ;;  %v1477_v17 = vor.u32 %v1767_v10, %v1474_v11  ;;  %v1777_v59 = vld [vmem:[#allocation2 + $0x284] sm:$0xf]  ;;  %v1810_v11 = vld [vmem:[#allocation5 + $0x78] sm:$0xff]  ;;  %v1808_v19 = vld [vmem:[#allocation5 + $0x68] sm:$0xff] }
  0x4e   :  { %750 = vmatpush.bf16.msrb.mxu1 %v1513_v26  ;;  %738 = vmatmul.bf16.vlgmr.msrb.gmra.mxu0 %v2015_v30  ;;  %v1402_v26 = vld [vmem:[#allocation2 + $0x1a8] sm:$0xf0] }
  0x4f   :  { %795 = vmatpush.bf16.msra.mxu0 %v1381_v21  ;;  %v1466_v21 = vld [vmem:[#allocation2 + $0x228] sm:$0xf0] }
  0x50   :  { %789 = vmatpush.bf16.msra.mxu2 %v1261_v31  ;;  %777 = vmatmul.bf16.vlgmr.msrb.gmra.mxu3 %v1992_v58  ;;  %v1549_v58 = vor.u32 %v1785_v5, %v1546_v6  ;;  %v1469_v29 = vor.u32 %v1765_v20, %v1466_v21  ;;  %v1731_v31 = vld [vmem:[#allocation2 + $0x114] sm:$0xf]  ;;  %v1798_v6 = vld [vmem:[#allocation5 + $0x18] sm:$0xff] }
  0x51   :  { %821 = vmatpush.bf16.msra.mxu3 %v1509_v22  ;;  %751 = vmatmul.bf16.vlgmr.msrb.gmra.mxu1 %v2017_v37  ;;  %v1413_v22 = vor.u32 %v1751_v12, %v1410_v14  ;;  %v1333_v39 = vor.u32 %v1731_v31, %v1330_v32  ;;  %v1799_v5 = vld [vmem:[#allocation5 + $0x20] sm:$0xff]  ;;  %v1806_v27 = vld [vmem:[#allocation5 + $0x58] sm:$0xff]  ;;  %v1805_v32 = vld [vmem:[#allocation5 + $0x50] sm:$0xff] }
  0x52   :  { %808 = vmatpush.bf16.msra.mxu1 %v1445_v34  ;;  %v1458_v34 = vld [vmem:[#allocation2 + $0x218] sm:$0xf0] }
  0x53   :  { %796 = vmatpush.bf16.msra.mxu0 %v1373_v38  ;;  %790 = vmatmul.bf16.vlgmr.msra.gmra.mxu2 %v1996_v4  ;;  %v1421_v4 = vor.u32 %v1753_v0, %v1418_v2  ;;  %v1747_v38 = vld [vmem:[#allocation2 + $0x194] sm:$0xf]  ;;  %v1461_v44 = vor.u32 %v1763_v33, %v1458_v34  ;;  %v1802_v0 = vld [vmem:[#allocation5 + $0x38] sm:$0xff]  ;;  %v1800_v2 = vld [vmem:[#allocation5 + $0x28] sm:$0xff] }
  0x54   :  { %834 = vmatpush.bf16.msrb.mxu2 %v1573_v35  ;;  %v1405_v35 = vor.u32 %v1749_v24, %v1402_v26  ;;  %v1397_v52 = vor.u32 %v1747_v38, %v1394_v40  ;;  %v1804_v38 = vld [vmem:[#allocation5 + $0x48] sm:$0xff] }
  0x55   :  { %822 = vmatpush.bf16.msra.mxu3 %v1501_v42  ;;  %v1522_v42 = vld [vmem:[#allocation2 + $0x298] sm:$0xf0] }
  0x56   :  { %809 = vmatpush.bf16.msra.mxu1 %v1437_v48  ;;  %v1450_v48 = vld [vmem:[#allocation2 + $0x208] sm:$0xf0] }
  0x57   :  { %797 = vmatpush.bf16.msra.mxu0 %v1365_v53  ;;  %v1525_v53 = vor.u32 %v1779_v41, %v1522_v42 }
  0x58   :  { %835 = vmatpush.bf16.msrb.mxu2 %v1565_v49  ;;  %v1793_v49 = vld [vmem:[#allocation2 + $0x304] sm:$0xf] }
  0x59   :  { %823 = vmatpush.bf16.msra.mxu3 %v1493_v57  ;;  %v1453_v57 = vor.u32 %v1761_v47, %v1450_v48  ;;  %v1581_v61 = vor.u32 %v1793_v49, %v1578_v50 }
  0x5a   :  { %810 = vmatpush.bf16.msra.mxu1 %v1429_v62  ;;  %v1389_v62 = vor.u32 %v1745_v55, %v1386_v56 }
  0x5b   :  { %798 = vmatpush.bf16.msra.mxu0 %v1357_v1  ;;  %v1801_v1 = vld [vmem:[#allocation5 + $0x30] sm:$0xff] }
  0x5c   :  { %836 = vmatpush.bf16.msrb.mxu2 %v1557_v63  ;;  %v1517_v63 = vor.u32 %v1777_v59, %v1514_v60 }
  0x5d   :  { %824 = vmatpush.bf16.msra.mxu3 %v1485_v7 }
  0x5e   :  { %811 = vmatpush.bf16.msra.mxu1 %v1421_v4 }
  0x5f   :  { %799 = vmatpush.bf16.msra.mxu0 %v1349_v13  ;;  %v1809_v13 = vld [vmem:[#allocation5 + $0x70] sm:$0xff] }
  0x60   :  { %837 = vmatpush.bf16.msrb.mxu2 %v1549_v58 }
  0x61   :  { %825 = vmatpush.bf16.msra.mxu3 %v1477_v17 }
  0x62   :  { %812 = vmatpush.bf16.msra.mxu1 %v1413_v22  ;;  %v1807_v22 = vld [vmem:[#allocation5 + $0x60] sm:$0xff] }
  0x63   :  { %800 = vmatpush.bf16.msra.mxu0 %v1341_v25 }
  0x64   :  { %838 = vmatpush.bf16.msrb.mxu2 %v1541_v23 }
  0x65   :  { %826 = vmatpush.bf16.msra.mxu3 %v1469_v29 }
  0x66   :  { %813 = vmatpush.bf16.msra.mxu1 %v1405_v35 }
  0x67   :  { %801 = vmatpush.bf16.msra.mxu0 %v1333_v39  ;;  %v1803_v39 = vld [vmem:[#allocation5 + $0x40] sm:$0xff] }
  0x68   :  { %839 = vmatpush.bf16.msrb.mxu2 %v1533_v36 }
  0x69   :  { %827 = vmatpush.bf16.msra.mxu3 %v1461_v44 }
  0x6a   :  { %814 = vmatpush.bf16.msra.mxu1 %v1397_v52 }
  0x6b   :  { %802 = vmatpush.bf16.msra.mxu0 %v1325_v54 }
  0x6c   :  { %840 = vmatpush.bf16.msrb.mxu2 %v1525_v53 }
  0x6d   :  { %828 = vmatpush.bf16.msra.mxu3 %v1453_v57 }
  0x6e   :  { %815 = vmatpush.bf16.msra.mxu1 %v1389_v62  ;;  %803 = vmatmul.bf16.vlgmr.msra.gmra.mxu0 %v1984_v51  ;;  %v1797_v51 = vld [vmem:[#allocation5 + $0x10] sm:$0xff] }
  0x6f   :  { %854 = vmatpush.bf16.msrb.mxu0 %v1581_v61 }
  0x70   :  { %829 = vmatmul.bf16.vlgmr.msra.gmra.mxu3 %v2015_v30  ;;  %841 = vmatpush.bf16.msrb.mxu2 %v1517_v63  ;;  %v1796_v30 = vld [vmem:[#allocation5 + $0x8] sm:$0xff] }
  0x71   :  { %816 = vmatmul.bf16.vlgmr.msra.gmra.mxu1 %v1994_v3  ;;  %1009 = vmatpush.bf16.msrb.mxu3 %v1810_v11  ;;  %v1830_v11 = vld [vmem:[%s2084_s4] ss:$0 sm:$0xff] }
  0x72   :  { %996 = vmatpush.bf16.msrb.mxu1 %v1802_v0 }
  0x73   :  { %842 = vmatmul.bf16.vlgmr.msrb.gmra.mxu2 %v2017_v37  ;;  %v1795_v37 = vld [vmem:[#allocation5] sm:$0xff] }
  0x75   :  { %1010 = vmatpush.bf16.msrb.mxu3 %v1809_v13 }
  0x76   :  { %997 = vmatpush.bf16.msrb.mxu1 %v1801_v1  ;;  %v1818_v1 = vld [vmem:[%s2085_s5 + $0x38] sm:$0xff] }
  0x77   :  { %1092 = vmatpush.bf16.msra.mxu0 %v1818_v1 }
  0x79   :  { %1011 = vmatpush.bf16.msrb.mxu3 %v1808_v19 }
  0x7a   :  { %998 = vmatpush.bf16.msrb.mxu1 %v1800_v2  ;;  %v1817_v2 = vld [vmem:[%s2085_s5 + $0x30] sm:$0xff] }
  0x7b   :  { %1093 = vmatpush.bf16.msra.mxu0 %v1817_v2 }
  0x7d   :  { %1012 = vmatpush.bf16.msrb.mxu3 %v1807_v22 }
  0x7e   :  { %1583 = vmatmul.msk.bf16.vlgmr.msrb.gmra.mxu0 %vm674_vm0, %v2005_v43  ;;  %999 = vmatpush.bf16.msrb.mxu1 %v1799_v5  ;;  %v178_v43 = vld [vmem:[%s2082_s2] sm:$0x3]  ;;  %v1816_v5 = vld [vmem:[%s2085_s5 + $0x28] sm:$0xff] }
  0x7f   :  { %v180_v58 = vperm.slane %v178_v43, 0  ;;  %v181_v42 = vperm.slane %v178_v43, 1  ;;  %1094 = vmatpush.bf16.msra.mxu0 %v1816_v5  ;;  %v1822_v43 = vld [vmem:[%s2087_s7 + $0x18] sm:$0xff] }
  0x80   :  { %1151 = vmatpush.bf16.msra.mxu2 %v1822_v43 }
  0x81   :  { %1013 = vmatpush.bf16.msrb.mxu3 %v1806_v27 }
  0x82   :  { %1000 = vmatpush.bf16.msrb.mxu1 %v1798_v6  ;;  %v1815_v6 = vld [vmem:[%s2085_s5 + $0x20] sm:$0xff] }
  0x83   :  { %1095 = vmatpush.bf16.msra.mxu0 %v1815_v6 }
  0x85   :  { %1014 = vmatpush.bf16.msrb.mxu3 %v1805_v32 }
  0x86   :  { %1001 = vmatpush.bf16.msrb.mxu1 %v1797_v51  ;;  %v1814_v51 = vld [vmem:[%s2085_s5 + $0x18] sm:$0xff] }
  0x87   :  { %1096 = vmatpush.bf16.msra.mxu0 %v1814_v51 }
  0x89   :  { %1015 = vmatpush.bf16.msrb.mxu3 %v1804_v38 }
  0x8a   :  { %1002 = vmatpush.bf16.msrb.mxu1 %v1796_v30  ;;  %v1813_v30 = vld [vmem:[%s2085_s5 + $0x10] sm:$0xff] }
  0x8b   :  { %1097 = vmatpush.bf16.msra.mxu0 %v1813_v30 }
  0x8d   :  { %1016 = vmatpush.bf16.msrb.mxu3 %v1803_v39 }
  0x8e   :  { %1003 = vmatpush.bf16.msrb.mxu1 %v1795_v37  ;;  %v1812_v37 = vld [vmem:[%s2085_s5 + $0x8] sm:$0xff] }
  0x8f   :  { %1098 = vmatpush.bf16.msra.mxu0 %v1812_v37 }
  0xab   :  { %v687_v7 = vpop.f32.mrf.mxu0 }
  0xac   :  { %v688_v14 = vadd.f32 %v687_v7, %v180_v58 }
  0xae   :  { %v700_v3 = vpop.f32.mrf.mxu1 }
  0xaf   :  { %v701_v16 = vadd.f32 %v700_v3, %v688_v14 }
  0xb2   :  { %v713_v8 = vpop.f32.mrf.mxu2 }
  0xb3   :  { %v726_v9 = vpop.f32.mrf.mxu3  ;;  %v689_v10 = vpop.f32.mrf.mxu0  ;;  %v714_v18 = vadd.f32 %v713_v8, %v701_v16  ;;  %v1811_v8 = vld [vmem:[%s2085_s5] sm:$0xff] }
  0xb4   :  { %1099 = vmatpush.bf16.msra.mxu0 %v1811_v8  ;;  %v1820_v10 = vld [vmem:[%s2087_s7 + $0x8] sm:$0xff]  ;;  %v1819_v16 = vld [vmem:[%s2087_s7] sm:$0xff] }
  0xb5   :  { %v727_v20 = vadd.f32 %v726_v9, %v714_v18  ;;  %v1821_v9 = vld [vmem:[%s2087_s7 + $0x10] sm:$0xff] }
  0xb6   :  { %v702_v4 = vpop.f32.mrf.mxu1  ;;  %1152 = vmatpush.bf16.msra.mxu2 %v1821_v9 }
  0xba   :  { %v715_v12 = vpop.f32.mrf.mxu2  ;;  %1153 = vmatpush.bf16.msra.mxu2 %v1820_v10 }
  0xbb   :  { %v728_v15 = vpop.f32.mrf.mxu3 }
  0xbe   :  { %1154 = vmatpush.bf16.msra.mxu2 %v1819_v16 }
  0xc2   :  { %v765_v17 = vpop.f32.mrf.mxu2 }
  0xca   :  { %v767_v24 = vpop.f32.mrf.mxu2 }
  0xcb   :  { %v739_v21 = vpop.f32.mrf.mxu0 }
  0xcc   :  { %v740_v23 = vadd.f32 %v739_v21, %v727_v20 }
  0xce   :  { %v752_v25 = vpop.f32.mrf.mxu1 }
  0xcf   :  { %v753_v26 = vadd.f32 %v752_v25, %v740_v23  ;;  %v1832_v23 = vld [vmem:[%s2088_s8] ss:$0 sm:$0xff] }
  0xd1   :  { %v766_v28 = vadd.f32 %v765_v17, %v753_v26  ;;  %v1831_v17 = vld [vmem:[%s2086_s6] ss:$0 sm:$0xff]  ;;  %s1921_s6 = smov [#allocation7]  }
  0xd2   :  { %s1177_s7 = sshll.u32 %s1921_s6, 4  ;;  %s1178_s7 = int_to_ptr.vmem [resolvable:$true] %s1177_s7 }
  0xd3   :  { %v860_v29 = vmax.f32 %v766_v28, 0.0  ;;  %v741_v31 = vpop.f32.mrf.mxu0  ;;  %v778_v35 = vpop.f32.mrf.mxu3 }
  0xd4   :  { %v779_v44 = vadd.f32 %v778_v35, %v181_v42 }
  0xd5   :  { %v862_v33 = vpack.c.bf16 %v860_v29, %v860_v29 }
  0xd6   :  { %v791_v34 = vpop.f32.mrf.mxu2  ;;  %v754_v36 = vpop.f32.mrf.mxu1 }
  0xd7   :  { %1004 = vmatmul.bf16.vlgmr.msrb.gmra.mxu1 %v862_v33  ;;  %v792_v46 = vadd.f32 %v791_v34, %v779_v44 }
  0xdb   :  { %v780_v41 = vpop.f32.mrf.mxu3 }
  0xde   :  { %v793_v40 = vpop.f32.mrf.mxu2 }
  0xeb   :  { %v804_v45 = vpop.f32.mrf.mxu0 }
  0xec   :  { %v805_v48 = vadd.f32 %v804_v45, %v792_v46 }
  0xee   :  { %v817_v47 = vpop.f32.mrf.mxu1 }
  0xef   :  { %v818_v52 = vadd.f32 %v817_v47, %v805_v48 }
  0xf3   :  { %v830_v49 = vpop.f32.mrf.mxu3  ;;  %v806_v50 = vpop.f32.mrf.mxu0 }
  0xf4   :  { %v831_v54 = vadd.f32 %v830_v49, %v818_v52 }
  0xf6   :  { %v843_v53 = vpop.f32.mrf.mxu2  ;;  %v819_v55 = vpop.f32.mrf.mxu1 }
  0xf7   :  { %v844_v56 = vadd.f32 %v843_v53, %v831_v54 }
  0xfb   :  { %v832_v57 = vpop.f32.mrf.mxu3  ;;  %v856_v59 = vpop.f32.mrf.mxu0 }
  0xfc   :  { %v857_v60 = vadd.f32 %v856_v59, %v844_v56 }
  0xfe   :  { %v845_v61 = vpop.f32.mrf.mxu2  ;;  %v861_v62 = vmax.f32 %v857_v60, 0.0 }
 0x100   :  { %v863_v63 = vpack.c.bf16 %v861_v62, %v861_v62 }
 0x102   :  { %1017 = vmatmul.bf16.vlgmr.msrb.gmra.mxu3 %v863_v63 }
 0x103   :  { %v858_v0 = vpop.f32.mrf.mxu0 }
 0x154   :  { %v1005_v7 = vpop.f32.mrf.mxu1 }
 0x155   :  { %v1006_v4 = vadd.f32 %v1830_v11, %v1005_v7 }
 0x15c   :  { %v1007_v3 = vpop.f32.mrf.mxu1 }
 0x185   :  { %v1018_v58 = vpop.f32.mrf.mxu3 }
 0x186   :  { %v1019_v12 = vadd.f32 %v1018_v58, %v1006_v4 }
 0x188   :  { %v1022_v13 = vmax.f32 %v1019_v12, 0.0 }
 0x18a   :  { %v1023_v14 = vpack.c.bf16 %v1022_v13, %v1022_v13 }
 0x18c   :  { %1100 = vmatmul.bf16.vlgmr.msra.gmra.mxu0 %v1023_v14 }
 0x18d   :  { %v1020_v15 = vpop.f32.mrf.mxu3 }
 0x209   :  { %v1101_v18 = vpop.f32.mrf.mxu0 }
 0x20a   :  { %v1102_v19 = vadd.f32 %v1831_v17, %v1101_v18 }
 0x20c   :  { %v1105_v20 = vmax.f32 %v1102_v19, 0.0 }
 0x20e   :  { %v1106_v21 = vpack.c.bf16 %v1105_v20, %v1105_v20 }
 0x210   :  { %1696 = vmatmul.msk.bf16.vlgmr.msra.gmra.mxu2 %vm1143_vm1, %v1106_v21 }
 0x211   :  { %v1103_v22 = vpop.f32.mrf.mxu0 }
 0x293   :  { %v1156_v24 = vpop.f32.mrf.mxu2 }
 0x294   :  { %v1157_v25 = vadd.f32 %v1832_v23, %v1156_v24 }
 0x296   :  { %1160 = vmax.xlane.f32.xlu0 %v1157_v25 }
 0x29b   :  { %v1158_v26 = vpop.f32.mrf.mxu2 }
 0x309   :  { %v1161_v27 = vpop.xlane.xlu0 %1160 }
 0x30a   :  { %v1162_v28 = vsub.f32 %v1157_v25, %v1161_v27 }
 0x30c   :  { %v1163_v29 = vmul.f32 1.442695, %v1162_v28 }
 0x30e   :  { %1833 = vpow2.f32 %v1163_v29 }
 0x314   :  { %v1834_v31 = vpop.eup %1833 }
 0x315   :  { %1165 = vadd.xlane.f32.xlu0 %v1834_v31 }
 0x388   :  { %v1166_v32 = vpop.xlane.xlu0 %1165 }
 0x389   :  { %1835 = vlog2.f32 %v1166_v32 }
 0x38f   :  { %v1836_v33 = vpop.eup %1835 }
 0x390   :  { %v1168_v34 = vmul.f32 0.6931472, %v1836_v33 }
 0x392   :  { %v1169_v35 = vsub.f32 %v1162_v28, %v1168_v34 }
 0x394   :  { %1171 = vst.msk [vmem:[#allocation7] sm:$0xff] %vm1170_vm2, %v1169_v35 }
 0x395   :  { %1182 = dma.vmem_to_hbm [thread:$0]  %s1178_s7, 128, %s1180_s19, [#allocation4]  }
 0x396   :  { %1913 = dma.done.wait [#allocation4], 128  }
 0x397   :  { %1914 = vsyncadd [#allocation4], 4294967168 }
 0x398   :  { %1187 = vsyncpa [#allocation3], 1 }
 0x399   :  { %1188 = vsyncpa [#allocation6], 1 }
 0x39a   :  { %1189 = vsyncpa [#allocation4], 1 }

</bundles_post_ra>
